<compile_context>
chip_gen: v7x
topology: tpu7x:2x2x1
jax: 0.10.0
libtpu: 0.0.40
codegen_flags: <defaults>
</compile_context>

<pallas_src>
import functools

import numpy as np
import jax
import jax.numpy as jnp
from jax.experimental import pallas as pl
from jax.experimental.pallas import tpu as pltpu

EPS = 1e-30
_LANE = 128
_SUBLANE = 8


def _round_up(x, m):
    return ((x + m - 1) // m) * m


def _pad2(a, rows, cols):
    return jnp.pad(a, ((0, rows - a.shape[0]), (0, cols - a.shape[1])))


# ----------------------------------------------------------------------------
# Literal module: StraightThroughEstimator forward == (x > 0).float()
# (the custom surrogate backward of STEFunction is training-only).
# ----------------------------------------------------------------------------
def _ste_kernel(x_ref, o_ref):
    o_ref[...] = (x_ref[...] > 0.0).astype(o_ref.dtype)


def straight_through_estimator(x, beta=1):
    # `beta` only affects the surrogate backward in the PyTorch module.
    del beta
    return pl.pallas_call(
        _ste_kernel,
        out_shape=jax.ShapeDtypeStruct(x.shape, jnp.float32),
    )(x)


# ----------------------------------------------------------------------------
# Fused HarsanyiNet kernel: one grid step = (batch tile b, layer l).
#   x_ref    : (TB, D)       padded input (only used at l == 0)
#   wmT_ref  : (L, D, D) or (D, D)   (fc.weight * mask)^T  (resident / streamed)
#   maskT_ref: (L, D, D) or (D, D)   mask^T as int8
#   wcT_ref  : (L, D, C) or (D, C)   classifier weight^T
#   y_ref    : (TB, C)       resident accumulator of summed classifier heads
#   z_scr    : (TB, D)       VMEM carry of block activations across layers
#
# CORRECTNESS INVARIANT: the layer axis MUST be the last grid dimension and
# MUST be "arbitrary" (sequential).  z_scr carries activations layer->layer
# and y_ref accumulates across layers with init gated on l == 0; reordering
# the grid or making the layer axis "parallel" silently corrupts the result.
# ----------------------------------------------------------------------------
def _fused_harsanyi_kernel(x_ref, wmT_ref, maskT_ref, wcT_ref, y_ref, z_scr,
                           *, gamma):
    l = pl.program_id(1)

    @pl.when(l == 0)
    def _():
        y_ref[...] = jnp.zeros_like(y_ref)

    # First layer reads the input block directly; later layers read the carry.
    x = jnp.where(l == 0, x_ref[...], z_scr[...])                  # (TB, D)

    resident = len(wmT_ref.shape) == 3      # whole weight stack lives in VMEM
    if resident:
        wmT = wmT_ref[l]                                           # (D, D)
        maskT = maskT_ref[l].astype(jnp.float32)                   # i8 -> f32
        wcT = wcT_ref[l]                                           # (D, C)
    else:
        wmT = wmT_ref[...]
        maskT = maskT_ref[...].astype(jnp.float32)
        wcT = wcT_ref[...]

    # masked linear: x @ (W_fc * mask)^T                      -> MXU
    s = jnp.dot(x, wmT, preferred_element_type=jnp.float32)

    # AND gate in log space: prod_j(mask*t + (1-mask)) == exp(sum_j mask*log t)
    #                                                        -> EUP + MXU
    t = jnp.tanh(gamma * jnp.abs(x))
    logt = jnp.log(jnp.maximum(t, 1e-30))          # clamp: t can be exactly 0
    delta = jnp.exp(jnp.dot(logt, maskT, preferred_element_type=jnp.float32))

    # block output, carry for next layer, per-layer classifier head accumulate
    z = jnp.maximum(s * delta, 0.0)
    z_scr[...] = z
    y_ref[...] += jnp.dot(z, wcT, preferred_element_type=jnp.float32)


# ----------------------------------------------------------------------------
# Weight preparation: pad/transpose/stack once, ONE STE kernel on the stack,
# mask-multiply fused in a single jit.  Call once and reuse across forwards.
# ----------------------------------------------------------------------------
@jax.jit
def _prep_stacks(vT, fcT, clsT):
    maskT = straight_through_estimator(vT)         # one STE call on (L, D, D)
    wmT = fcT * maskT
    return wmT, maskT.astype(jnp.int8), clsT


def prepare_harsanyi_weights(params):
    hidden_dim = params[0][0].shape[0]
    num_classes = params[0][2].shape[0]
    max_in = max(p[0].shape[1] for p in params)

    D = _round_up(max(max_in, hidden_dim), _LANE)   # lane-dense feature dim
    C = _round_up(num_classes, _LANE)               # lane-dense class dim

    vT = jnp.stack([_pad2(v.T, D, D) for (v, _, _) in params])
    fcT = jnp.stack([_pad2(fc.T, D, D) for (_, fc, _) in params])
    clsT = jnp.stack([_pad2(cls.T, D, C) for (_, _, cls) in params])
    wmT, maskT_i8, wcT = _prep_stacks(vT, fcT, clsT)

    return dict(wmT=wmT, maskT=maskT_i8, wcT=wcT, D=D, C=C,
                num_classes=num_classes, num_layers=len(params))


# ----------------------------------------------------------------------------
# Tiling / VMEM planning helpers.
# ----------------------------------------------------------------------------
def _vmem_capacity_bytes():
    try:
        return int(pltpu.get_tpu_info().vmem_capacity_bytes)
    except Exception:
        return 64 * 1024 * 1024      # conservative: v7x per-TensorCore VMEM


def _weight_slab_bytes(D, C):
    # wmT f32 + maskT int8 + wcT f32, per layer
    return D * D * 4 + D * D * 1 + D * C * 4


def _act_bytes(TB, D, C):
    # double-buffered x & y blocks + the z carry scratch
    return 2 * TB * D * 4 + 2 * TB * C * 4 + TB * D * 4


def _choose_batch_tile(B):
    if B < 16:
        tb = _round_up(max(B, 1), _SUBLANE)
        return tb, tb
    # >= 2 "parallel" batch tiles so v7x's two TensorCores both get work;
    # cap at 256 (v6e sweet spot); pick the tile minimizing padding waste,
    # preferring larger tiles on ties (fewer grid steps).
    max_tb = min(256, _round_up((B + 1) // 2, _SUBLANE))
    best_tb, best_key = _SUBLANE, None
    for tb in range(_SUBLANE, max_tb + 1, _SUBLANE):
        waste = _round_up(B, tb) - B
        key = (waste, -tb)
        if best_key is None or key < best_key:
            best_key, best_tb = key, tb
    return best_tb, _round_up(B, best_tb)


# ----------------------------------------------------------------------------
# Wrapper: one fused pallas_call over (batch tiles, layers).
# ----------------------------------------------------------------------------
def harsanyi_net_forward(x, params=None, gamma=100.0, batch_tile=None,
                         prepared=None):
    """HarsanyiNet.forward: sum of per-layer classifier heads (one kernel)."""
    if prepared is None:
        prepared = prepare_harsanyi_weights(params)
    if x.ndim > 2:
        x = jnp.squeeze(x, axis=1)
    B, in_dim = x.shape

    D, C = prepared["D"], prepared["C"]
    L = prepared["num_layers"]
    num_classes = prepared["num_classes"]
    wmT_s, maskT_s, wcT_s = prepared["wmT"], prepared["maskT"], prepared["wcT"]

    if batch_tile is not None:
        TB = _round_up(batch_tile, _SUBLANE)
        B_pad = _round_up(B, TB)
    else:
        TB, B_pad = _choose_batch_tile(B)

    x_pad = jnp.zeros((B_pad, D), jnp.float32).at[:B, :in_dim].set(x)

    cap = _vmem_capacity_bytes()
    # Budget 2x for the constant-index weight stack (pipeliner may still
    # allocate double buffers), plus activation blocks & carry scratch.
    resident_bytes = 2 * L * _weight_slab_bytes(D, C) + _act_bytes(TB, D, C)
    resident = resident_bytes <= int(0.7 * cap)

    if resident:
        need = resident_bytes
        # Full-stack blocks with a constant index map: DMA'd once, then every
        # (batch tile, layer) step reads them straight out of VMEM.
        w_specs = [
            pl.BlockSpec((L, D, D), lambda b, l: (0, 0, 0)),   # wmT stack
            pl.BlockSpec((L, D, D), lambda b, l: (0, 0, 0)),   # maskT stack
            pl.BlockSpec((L, D, C), lambda b, l: (0, 0, 0)),   # wcT stack
        ]
    else:
        # Streaming fallback: per-layer slabs, triple-buffered to hide DMA
        # when per-step compute is small.
        need = 3 * _weight_slab_bytes(D, C) + _act_bytes(TB, D, C)
        w_specs = [
            pl.BlockSpec((None, D, D), lambda b, l: (l, 0, 0),
                         pipeline_mode=pl.Buffered(3)),
            pl.BlockSpec((None, D, D), lambda b, l: (l, 0, 0),
                         pipeline_mode=pl.Buffered(3)),
            pl.BlockSpec((None, D, C), lambda b, l: (l, 0, 0),
                         pipeline_mode=pl.Buffered(3)),
        ]
    vmem_limit = int(min(cap, max(need + (8 << 20), 32 << 20)))

    kernel = functools.partial(_fused_harsanyi_kernel, gamma=float(gamma))
    # Layer axis MUST stay last and "arbitrary" (sequential carry / accumulate).
    grid = (B_pad // TB, L)

    y_pad = pl.pallas_call(
        kernel,
        out_shape=jax.ShapeDtypeStruct((B_pad, C), jnp.float32),
        grid_spec=pltpu.PrefetchScalarGridSpec(
            num_scalar_prefetch=0,
            grid=grid,
            in_specs=[pl.BlockSpec((TB, D), lambda b, l: (b, 0))] + w_specs,
            out_specs=pl.BlockSpec((TB, C), lambda b, l: (b, 0)),
            scratch_shapes=[pltpu.VMEM((TB, D), jnp.float32)],    # z carry
        ),
        compiler_params=pltpu.CompilerParams(
            dimension_semantics=("parallel", "arbitrary"),
            vmem_limit_bytes=vmem_limit),
    )(x_pad, wmT_s, maskT_s, wcT_s)

    return y_pad[:B, :num_classes]


# ----------------------------------------------------------------------------
# Deterministic parameter construction (mirrors HarsanyiBlock / HarsanyiNet
# shapes; xavier-uniform fc weights, +/-initial_V for V).
# ----------------------------------------------------------------------------
def xavier_uniform(key, shape):
    fan_out, fan_in = shape
    bound = float(np.sqrt(6.0 / (fan_in + fan_out)))
    return jax.random.uniform(key, shape, jnp.float32, -bound, bound)


def init_v_weight(np_rng, out_dim, in_dim, act_ratio, initial_V=1.0):
    w = np.full((out_dim, in_dim), -initial_V, dtype=np.float32)
    n_act = int(act_ratio * in_dim)
    for i in range(out_dim):
        idx = np_rng.choice(in_dim, n_act, replace=False)
        w[i, idx] = initial_V
    return jnp.asarray(w)


def build_params(key, input_dim, hidden_dim, num_classes, num_layers,
                 act_ratio=0.5, initial_V=1.0):
    np_rng = np.random.default_rng(0)
    first_layer_act_ratio = max((1.0 + EPS) / input_dim, act_ratio)
    params = []
    for layer_index in range(num_layers):
        in_dim = input_dim if layer_index == 0 else hidden_dim
        ratio = first_layer_act_ratio if layer_index == 0 else act_ratio
        key, k_fc, k_cls = jax.random.split(key, 3)
        v_w = init_v_weight(np_rng, hidden_dim, in_dim, ratio, initial_V)
        fc_w = xavier_uniform(k_fc, (hidden_dim, in_dim))
        cls_w = xavier_uniform(k_cls, (num_classes, hidden_dim))
        params.append((v_w, fc_w, cls_w))
    return params


# ----------------------------------------------------------------------------
# Pure-JAX reference (direct product AND gate, unpadded) for correctness.
# ----------------------------------------------------------------------------
def reference_forward(x, params, gamma=100.0):
    if x.ndim > 2:
        x = jnp.squeeze(x, axis=1)
    hidden_y = None
    for (v_w, fc_w, cls_w) in params:
        mask = (v_w > 0.0).astype(jnp.float32)
        wm = fc_w * mask
        s = x @ wm.T
        t = jnp.tanh(gamma * jnp.abs(x))
        de = mask[None, :, :] * t[:, None, :] + (1.0 - mask[None, :, :])
        delta = jnp.prod(de, axis=-1)
        z = jnp.maximum(s * delta, 0.0)
        y = z @ cls_w.T
        hidden_y = y if hidden_y is None else hidden_y + y
        x = z
    return hidden_y


if __name__ == "__main__":
    # small shapes consistent with HarsanyiNet(input_dim, num_classes,
    # num_layers, hidden_dim): x is (batch, input_dim)
    batch, input_dim, hidden_dim, num_classes, num_layers = 8, 16, 32, 4, 2
    gamma = 100.0  # beta only affects the STE backward pass (not implemented)

    key = jax.random.PRNGKey(0)
    key, kx, kp = jax.random.split(key, 3)
    x = jax.random.normal(kx, (batch, input_dim), jnp.float32)
    params = build_params(kp, input_dim, hidden_dim, num_classes, num_layers)

    # Literal StraightThroughEstimator check: (V > 0).float()
    ste_out = jax.block_until_ready(straight_through_estimator(params[0][0]))
    np.testing.assert_allclose(np.asarray(ste_out),
                               (np.asarray(params[0][0]) > 0).astype(np.float32))

    # Prepare (STE + masking + padding + stacking) ONCE, reuse across forwards.
    prepared = jax.tree_util.tree_map(jax.block_until_ready,
                                      prepare_harsanyi_weights(params))

    out = harsanyi_net_forward(x, gamma=gamma, prepared=prepared)
    out = jax.block_until_ready(out)

    ref = reference_forward(x, params, gamma)
    np.testing.assert_allclose(np.asarray(out), np.asarray(ref),
                               rtol=1e-4, atol=1e-5)
    assert out.shape == (batch, num_classes)
    print("KERNEL_OK")
</pallas_src>

<mosaic_0001>
module attributes {stable_mosaic.version = 11 : i64} {
  func.func @_ste_kernel(%arg0: memref<32x16xf32, #tpu.memory_space<vmem>>, %arg1: memref<32x16xf32, #tpu.memory_space<vmem>>) attributes {dimension_semantics = [], scalar_prefetch = 0 : i64, scratch_operands = 0 : i64, tpu.core_type = #tpu.core_type<tc>} {
    %c0 = arith.constant 0 : index
    %c0_0 = arith.constant 0 : index
    %0 = vector.load %arg0[%c0, %c0_0] : memref<32x16xf32, #tpu.memory_space<vmem>>, vector<32x16xf32>
    %cst = arith.constant 0.000000e+00 : f32
    %1 = vector.broadcast %cst : f32 to vector<32x16xf32>
    %2 = arith.cmpf ogt, %0, %1 : vector<32x16xf32>
    %3 = arith.extui %2 : vector<32x16xi1> to vector<32x16xi32>
    %4 = arith.sitofp %3 : vector<32x16xi32> to vector<32x16xf32>
    %c0_1 = arith.constant 0 : index
    %c0_2 = arith.constant 0 : index
    %5 = vector.load %arg1[%c0_1, %c0_2] : memref<32x16xf32, #tpu.memory_space<vmem>>, vector<32x16xf32>
    tpu.vector_store %arg1[%c0_1, %c0_2], %4 {strides = array<i32>} : memref<32x16xf32, #tpu.memory_space<vmem>>, vector<32x16xf32>,
    return
  }
}

</mosaic_0001>

<bundles_post_ra>
// kernel: tpu_custom_call.1
= control target key start
LH: loop header
LB: loop body
LE: loop exit
PB: predicated region body
PF: predicated region fallthrough
CT: control target
= control target key end

     0   :  { %vm24_vm0 = vcmask 130048   ;;  %v38_v4 = vmov 0.0   ;;  %s77_s0 = inlined_call_operand.vmem [shape: f32[32,16], index: 0, kind: input, shape index: {}]   ;;  %s78_s1 = inlined_call_operand.vmem [shape: f32[32,16], index: 1, kind: output, shape index: {}]  }
   0x1   :  { %v8_v0 = vld [vmem:[%s77_s0] sm:$0xff]  ;;  %v9_v1 = vld [vmem:[%s77_s0 + $0x8] sm:$0xff]  ;;  %v10_v2 = vld [vmem:[%s77_s0 + $0x10] sm:$0xff] }
   0x2   :  { %vm12_vm1 = vcmp.gt.f32.partialorder %v8_v0, 0.0  ;;  %vm13_vm2 = vcmp.gt.f32.partialorder %v9_v1, 0.0  ;;  %vm14_vm3 = vcmp.gt.f32.partialorder %v10_v2, 0.0  ;;  %v11_v3 = vld [vmem:[%s77_s0 + $0x18] sm:$0xff] }
   0x3   :  { %v33_v5 = vsel %vm12_vm1, 1.0, %v38_v4  ;;  %v34_v6 = vsel %vm13_vm2, 1.0, %v38_v4  ;;  %v35_v7 = vsel %vm14_vm3, 1.0, %v38_v4  ;;  %vm15_vm4 = vcmp.gt.f32.partialorder %v11_v3, 0.0 }
   0x4   :  { %25 = vst.msk [vmem:[%s78_s1] sm:$0xff] %vm24_vm0, %v33_v5  ;;  %26 = vst.msk [vmem:[%s78_s1 + $0x8] sm:$0xff] %vm24_vm0, %v34_v6  ;;  %v36_v8 = vsel %vm15_vm4, 1.0, %v38_v4 }
   0x5   :  { %27 = vst.msk [vmem:[%s78_s1 + $0x10] sm:$0xff] %vm24_vm0, %v35_v7  ;;  %28 = vst.msk [vmem:[%s78_s1 + $0x18] sm:$0xff] %vm24_vm0, %v36_v8 }

</bundles_post_ra>
